<compile_context>
chip_gen: v7x
topology: tpu7x:2x2x1
jax: 0.10.0
libtpu: 0.0.40
codegen_flags: <defaults>
</compile_context>

<pallas_src>
import functools

import jax
import jax.numpy as jnp
from jax.experimental import pallas as pl
from jax.experimental.pallas import tpu as pltpu


def _round_up(x, m):
    return ((x + m - 1) // m) * m


def _ffn_kernel(x_ref, gamma_ref, beta_ref, w1_ref, b1_ref, w2_ref, b2_ref,
                o_ref, xn_ref, acc_ref, *, eps, compute_dtype):
    k = pl.program_id(1)
    nk = pl.num_programs(1)

    # --- init for this row tile: LayerNorm once, zero the accumulator ---
    @pl.when(k == 0)
    def _():
        x = x_ref[...].astype(jnp.float32)                       # (tm, d_model)
        mu = jnp.mean(x, axis=-1, keepdims=True)
        xc = x - mu
        var = jnp.mean(xc * xc, axis=-1, keepdims=True)           # biased var (torch)
        xn = xc * jax.lax.rsqrt(var + eps)
        xn = xn * gamma_ref[...].astype(jnp.float32) + beta_ref[...].astype(jnp.float32)
        xn_ref[...] = xn.astype(compute_dtype)
        acc_ref[...] = jnp.zeros_like(acc_ref)

    # --- fc1 chunk + ReLU (dropout_1 = identity in eval) ---
    h = jnp.dot(xn_ref[...], w1_ref[...], preferred_element_type=jnp.float32)
    h = jnp.maximum(h + b1_ref[...].astype(jnp.float32), 0.0)     # (tm, th)

    # --- fc2 chunk accumulate (dropout_2 = identity in eval) ---
    acc_ref[...] += jnp.dot(h.astype(compute_dtype), w2_ref[...],
                            preferred_element_type=jnp.float32)   # (tm, d_model)

    # --- finalize: bias, residual, store ---
    @pl.when(k == nk - 1)
    def _():
        x = x_ref[...].astype(jnp.float32)
        y = acc_ref[...] + b2_ref[...].astype(jnp.float32) + x
        o_ref[...] = y.astype(o_ref.dtype)


def positionwise_ffn(x, gamma, beta, w1_t, b1, w2_t, b2, *,
                     eps=1e-6, tm=256, th=512):
    """x: [rows, d_model]; w1_t: [d_model, d_hidden]; w2_t: [d_hidden, d_model].

    gamma/beta: [1, d_model]; b1: [1, d_hidden]; b2: [1, d_model].
    Matmuls run in the dtype of the weights (pass bf16 weights for bf16 MXU);
    accumulation / LayerNorm / residual are f32.
    """
    rows, d_model = x.shape
    d_hidden = w1_t.shape[1]
    compute_dtype = w1_t.dtype

    # Effective row tile: large for throughput, clamped for tiny inputs.
    tm_eff = min(tm, _round_up(rows, 8))
    rows_pad = _round_up(rows, tm_eff)

    # Effective hidden tile: either the full d_hidden or a 128-multiple chunk.
    if d_hidden <= th:
        th_eff = d_hidden
        d_hidden_pad = d_hidden
    else:
        assert th % 128 == 0, "hidden tile must be a multiple of 128"
        th_eff = th
        d_hidden_pad = _round_up(d_hidden, th_eff)

    # Zero-padding is exact: relu(0*x + 0) = 0 and 0 @ W2_pad contributes 0.
    if rows_pad != rows:
        x = jnp.pad(x, ((0, rows_pad - rows), (0, 0)))
    if d_hidden_pad != d_hidden:
        hp = d_hidden_pad - d_hidden
        w1_t = jnp.pad(w1_t, ((0, 0), (0, hp)))
        b1 = jnp.pad(b1, ((0, 0), (0, hp)))
        w2_t = jnp.pad(w2_t, ((hp and 0, hp), (0, 0)))

    grid = (rows_pad // tm_eff, d_hidden_pad // th_eff)
    kernel = functools.partial(_ffn_kernel, eps=eps, compute_dtype=compute_dtype)

    # VMEM budget (double-buffered I/O tiles + weight tiles + scratch) -> explicit limit.
    def _isz(dt):
        return jnp.dtype(dt).itemsize
    est = (2 * 2 * tm_eff * d_model * _isz(x.dtype)                     # x + out tiles
           + 2 * (d_model * th_eff + th_eff * d_model + th_eff) * _isz(compute_dtype)
           + 2 * 3 * d_model * _isz(gamma.dtype)                        # gamma/beta/b2
           + tm_eff * d_model * (_isz(compute_dtype) + 4))              # xn + acc scratch
    vmem_limit = int(min(max(2 * est + (4 << 20), 32 << 20), 48 << 20))

    cost = pl.CostEstimate(
        flops=4 * rows_pad * d_model * d_hidden_pad,
        transcendentals=rows_pad,
        bytes_accessed=(2 * rows * d_model * _isz(x.dtype)
                        + (2 * d_model * d_hidden + d_hidden + 3 * d_model)
                        * _isz(compute_dtype)),
    )

    out = pl.pallas_call(
        kernel,
        out_shape=jax.ShapeDtypeStruct((rows_pad, d_model), x.dtype),
        grid_spec=pltpu.PrefetchScalarGridSpec(
            num_scalar_prefetch=0,
            grid=grid,
            in_specs=[
                pl.BlockSpec((tm_eff, d_model), lambda i, k: (i, 0)),    # x tile
                pl.BlockSpec((1, d_model), lambda i, k: (0, 0)),         # gamma
                pl.BlockSpec((1, d_model), lambda i, k: (0, 0)),         # beta
                pl.BlockSpec((d_model, th_eff), lambda i, k: (0, k)),    # W1^T chunk
                pl.BlockSpec((1, th_eff), lambda i, k: (0, k)),          # b1 chunk
                pl.BlockSpec((th_eff, d_model), lambda i, k: (k, 0)),    # W2^T chunk
                pl.BlockSpec((1, d_model), lambda i, k: (0, 0)),         # b2
            ],
            out_specs=pl.BlockSpec((tm_eff, d_model), lambda i, k: (i, 0)),
            scratch_shapes=[
                pltpu.VMEM((tm_eff, d_model), compute_dtype),            # cached xn
                pltpu.VMEM((tm_eff, d_model), jnp.float32),              # fc2 accumulator
            ],
        ),
        compiler_params=pltpu.CompilerParams(
            dimension_semantics=("parallel", "arbitrary"),
            vmem_limit_bytes=vmem_limit),
        cost_estimate=cost,
    )(x, gamma, beta, w1_t, b1, w2_t, b2)

    if rows_pad != rows:
        out = out[:rows]
    return out


def _reference(x, gamma, beta, w1_t, b1, w2_t, b2, eps=1e-6):
    """Pure-JAX reference mirroring the kernel's precision policy."""
    cd = w1_t.dtype
    xf = x.astype(jnp.float32)
    mu = jnp.mean(xf, -1, keepdims=True)
    var = jnp.mean((xf - mu) ** 2, -1, keepdims=True)
    xn = ((xf - mu) * jax.lax.rsqrt(var + eps)) * gamma.astype(jnp.float32) \
        + beta.astype(jnp.float32)
    h = jnp.dot(xn.astype(cd), w1_t, preferred_element_type=jnp.float32)
    h = jnp.maximum(h + b1.astype(jnp.float32), 0.0)
    y = jnp.dot(h.astype(cd), w2_t, preferred_element_type=jnp.float32)
    y = y + b2.astype(jnp.float32) + xf
    return y.astype(x.dtype)


def _make_params(key, d_model, d_hidden, dtype=jnp.float32):
    k1, k2, k3, k4 = jax.random.split(key, 4)
    bound1 = 1.0 / (d_model ** 0.5)
    w1_t = jax.random.uniform(k1, (d_model, d_hidden), minval=-bound1, maxval=bound1)
    b1 = jax.random.uniform(k2, (1, d_hidden), minval=-bound1, maxval=bound1)
    bound2 = 1.0 / (d_hidden ** 0.5)
    w2_t = jax.random.uniform(k3, (d_hidden, d_model), minval=-bound2, maxval=bound2)
    b2 = jax.random.uniform(k4, (1, d_model), minval=-bound2, maxval=bound2)
    gamma = jnp.ones((1, d_model), jnp.float32)
    beta = jnp.zeros((1, d_model), jnp.float32)
    return (gamma, beta,
            w1_t.astype(dtype), b1.astype(jnp.float32),
            w2_t.astype(dtype), b2.astype(jnp.float32))


if __name__ == "__main__":
    key = jax.random.PRNGKey(0)
    kx1, kp1, kx2, kp2, kx3, kp3 = jax.random.split(key, 6)

    # --- Test 1: original toy shapes (single hidden chunk), f32, tight check ---
    batch, seq, d_model, d_hidden = 2, 8, 32, 64
    x = jax.random.normal(kx1, (batch, seq, d_model), dtype=jnp.float32)
    params = _make_params(kp1, d_model, d_hidden, jnp.float32)
    x2d = x.reshape(batch * seq, d_model)
    out = jax.block_until_ready(positionwise_ffn(x2d, *params))
    ref = _reference(x2d, *params)
    assert jnp.allclose(out, ref, atol=1e-5, rtol=1e-5), "f32 small mismatch"

    # --- Test 2: lane-dense dims + multi-chunk hidden reduction (th=128), f32 ---
    d_model, d_hidden = 128, 384
    x = jax.random.normal(kx2, (batch, seq, d_model), dtype=jnp.float32)
    params = _make_params(kp2, d_model, d_hidden, jnp.float32)
    x2d = x.reshape(batch * seq, d_model)
    out = jax.block_until_ready(positionwise_ffn(x2d, *params, th=128))
    ref = _reference(x2d, *params)
    assert jnp.allclose(out, ref, atol=1e-4, rtol=1e-4), "f32 tiled mismatch"

    # --- Test 3: bf16 MXU path (bf16 weights, f32 accumulation), loose check ---
    x = jax.random.normal(kx3, (batch, seq, d_model), dtype=jnp.float32)
    params = _make_params(kp3, d_model, d_hidden, jnp.bfloat16)
    x2d = x.reshape(batch * seq, d_model)
    out = jax.block_until_ready(positionwise_ffn(x2d, *params, th=128))
    ref = _reference(x2d, *params)
    assert jnp.allclose(out, ref, atol=1e-2, rtol=1e-2), "bf16 mismatch"

    print("KERNEL_OK")
</pallas_src>

<mosaic_0001>
module attributes {stable_mosaic.version = 11 : i64} {
  func.func @_ffn_kernel(%arg0: i32, %arg1: i32, %arg2: memref<16x32xf32, #tpu.memory_space<vmem>>, %arg3: memref<1x32xf32, #tpu.memory_space<vmem>>, %arg4: memref<1x32xf32, #tpu.memory_space<vmem>>, %arg5: memref<32x64xf32, #tpu.memory_space<vmem>>, %arg6: memref<1x64xf32, #tpu.memory_space<vmem>>, %arg7: memref<64x32xf32, #tpu.memory_space<vmem>>, %arg8: memref<1x32xf32, #tpu.memory_space<vmem>>, %arg9: memref<16x32xf32, #tpu.memory_space<vmem>>, %arg10: memref<16x32xf32, #tpu.memory_space<vmem>>, %arg11: memref<16x32xf32, #tpu.memory_space<vmem>>) attributes {dimension_semantics = [#tpu.dimension_semantics<parallel>, #tpu.dimension_semantics<arbitrary>], iteration_bounds = array<i64: 1, 1>, scalar_prefetch = 0 : i64, scratch_operands = 2 : i64, tpu.core_type = #tpu.core_type<tc>, window_params = [{transform_indices = @transform_0, window_bounds = array<i64: 16, 32>}, {pipeline_mode = #tpu.pipeline_mode<synchronous>, transform_indices = @transform_1, window_bounds = array<i64: 1, 32>}, {pipeline_mode = #tpu.pipeline_mode<synchronous>, transform_indices = @transform_2, window_bounds = array<i64: 1, 32>}, {transform_indices = @transform_3, window_bounds = array<i64: 32, 64>}, {transform_indices = @transform_4, window_bounds = array<i64: 1, 64>}, {transform_indices = @transform_5, window_bounds = array<i64: 64, 32>}, {pipeline_mode = #tpu.pipeline_mode<synchronous>, transform_indices = @transform_6, window_bounds = array<i64: 1, 32>}, {transform_indices = @transform_7, window_bounds = array<i64: 16, 32>}]} {
    %c0_i32 = arith.constant 0 : i32
    %0 = arith.cmpi eq, %arg1, %c0_i32 : i32
    %1 = arith.extui %0 : i1 to i32
    %c0_i32_0 = arith.constant 0 : i32
    %2 = arith.cmpi ne, %1, %c0_i32_0 : i32
    scf.if %2 {
      %c0_16 = arith.constant 0 : index
      %c0_17 = arith.constant 0 : index
      %19 = vector.load %arg2[%c0_16, %c0_17] : memref<16x32xf32, #tpu.memory_space<vmem>>, vector<16x32xf32>
      %cst_18 = arith.constant dense<0.000000e+00> : vector<16xf32>
      %20 = vector.multi_reduction <add>, %19, %cst_18 [1] : vector<16x32xf32> to vector<16xf32>
      %21 = vector.shape_cast %20 : vector<16xf32> to vector<16x1xf32>
      %cst_19 = arith.constant 3.200000e+01 : f32
      %22 = vector.broadcast %cst_19 : f32 to vector<16x1xf32>
      %23 = arith.divf %21, %22 : vector<16x1xf32>
      %24 = vector.broadcast %23 : vector<16x1xf32> to vector<16x32xf32>
      %25 = arith.subf %19, %24 : vector<16x32xf32>
      %26 = arith.mulf %25, %25 : vector<16x32xf32>
      %cst_20 = arith.constant dense<0.000000e+00> : vector<16xf32>
      %27 = vector.multi_reduction <add>, %26, %cst_20 [1] : vector<16x32xf32> to vector<16xf32>
      %28 = vector.shape_cast %27 : vector<16xf32> to vector<16x1xf32>
      %cst_21 = arith.constant 3.200000e+01 : f32
      %29 = vector.broadcast %cst_21 : f32 to vector<16x1xf32>
      %30 = arith.divf %28, %29 : vector<16x1xf32>
      %cst_22 = arith.constant 9.99999997E-7 : f32
      %31 = vector.broadcast %cst_22 : f32 to vector<16x1xf32>
      %32 = arith.addf %30, %31 : vector<16x1xf32>
      %33 = math.rsqrt %32 : vector<16x1xf32>
      %34 = vector.broadcast %33 : vector<16x1xf32> to vector<16x32xf32>
      %35 = arith.mulf %25, %34 : vector<16x32xf32>
      %c0_23 = arith.constant 0 : index
      %c0_24 = arith.constant 0 : index
      %36 = vector.load %arg3[%c0_23, %c0_24] : memref<1x32xf32, #tpu.memory_space<vmem>>, vector<1x32xf32>
      %37 = vector.broadcast %36 : vector<1x32xf32> to vector<16x32xf32>
      %38 = arith.mulf %35, %37 : vector<16x32xf32>
      %c0_25 = arith.constant 0 : index
      %c0_26 = arith.constant 0 : index
      %39 = vector.load %arg4[%c0_25, %c0_26] : memref<1x32xf32, #tpu.memory_space<vmem>>, vector<1x32xf32>
      %40 = vector.broadcast %39 : vector<1x32xf32> to vector<16x32xf32>
      %41 = arith.addf %38, %40 : vector<16x32xf32>
      %c0_27 = arith.constant 0 : index
      %c0_28 = arith.constant 0 : index
      %42 = vector.load %arg10[%c0_27, %c0_28] : memref<16x32xf32, #tpu.memory_space<vmem>>, vector<16x32xf32>
      tpu.vector_store %arg10[%c0_27, %c0_28], %41 {strides = array<i32>} : memref<16x32xf32, #tpu.memory_space<vmem>>, vector<16x32xf32>,
      %cst_29 = arith.constant 0.000000e+00 : f32
      %43 = vector.broadcast %cst_29 : f32 to vector<16x32xf32>
      %c0_30 = arith.constant 0 : index
      %c0_31 = arith.constant 0 : index
      %44 = vector.load %arg11[%c0_30, %c0_31] : memref<16x32xf32, #tpu.memory_space<vmem>>, vector<16x32xf32>
      tpu.vector_store %arg11[%c0_30, %c0_31], %43 {strides = array<i32>} : memref<16x32xf32, #tpu.memory_space<vmem>>, vector<16x32xf32>,
    } else {
    }
    %c0 = arith.constant 0 : index
    %c0_1 = arith.constant 0 : index
    %3 = vector.load %arg10[%c0, %c0_1] : memref<16x32xf32, #tpu.memory_space<vmem>>, vector<16x32xf32>
    %c0_2 = arith.constant 0 : index
    %c0_3 = arith.constant 0 : index
    %4 = vector.load %arg5[%c0_2, %c0_3] : memref<32x64xf32, #tpu.memory_space<vmem>>, vector<32x64xf32>
    %cst = arith.constant dense<0.000000e+00> : vector<16x64xf32>
    %5 = tpu.matmul %3, %4, %cst {dimension_numbers = #tpu.dot_dimension_numbers<[1], [0], [0], [1], [0, 0, 1, 1], [], []>} : vector<16x32xf32>, vector<32x64xf32>, vector<16x64xf32> -> vector<16x64xf32>
    %c0_4 = arith.constant 0 : index
    %c0_5 = arith.constant 0 : index
    %6 = vector.load %arg6[%c0_4, %c0_5] : memref<1x64xf32, #tpu.memory_space<vmem>>, vector<1x64xf32>
    %7 = vector.broadcast %6 : vector<1x64xf32> to vector<16x64xf32>
    %8 = arith.addf %5, %7 : vector<16x64xf32>
    %cst_6 = arith.constant 0.000000e+00 : f32
    %9 = vector.broadcast %cst_6 : f32 to vector<16x64xf32>
    %10 = arith.maximumf %8, %9 : vector<16x64xf32>
    %c0_7 = arith.constant 0 : index
    %c0_8 = arith.constant 0 : index
    %11 = vector.load %arg11[%c0_7, %c0_8] : memref<16x32xf32, #tpu.memory_space<vmem>>, vector<16x32xf32>
    %c0_9 = arith.constant 0 : index
    %c0_10 = arith.constant 0 : index
    %12 = vector.load %arg7[%c0_9, %c0_10] : memref<64x32xf32, #tpu.memory_space<vmem>>, vector<64x32xf32>
    %cst_11 = arith.constant dense<0.000000e+00> : vector<16x32xf32>
    %13 = tpu.matmul %10, %12, %cst_11 {dimension_numbers = #tpu.dot_dimension_numbers<[1], [0], [0], [1], [0, 0, 1, 1], [], []>} : vector<16x64xf32>, vector<64x32xf32>, vector<16x32xf32> -> vector<16x32xf32>
    %14 = arith.addf %11, %13 : vector<16x32xf32>
    %c0_12 = arith.constant 0 : index
    %c0_13 = arith.constant 0 : index
    %15 = vector.load %arg11[%c0_12, %c0_13] : memref<16x32xf32, #tpu.memory_space<vmem>>, vector<16x32xf32>
    tpu.vector_store %arg11[%c0_12, %c0_13], %14 {strides = array<i32>} : memref<16x32xf32, #tpu.memory_space<vmem>>, vector<16x32xf32>,
    %c0_i32_14 = arith.constant 0 : i32
    %16 = arith.cmpi eq, %arg1, %c0_i32_14 : i32
    %17 = arith.extui %16 : i1 to i32
    %c0_i32_15 = arith.constant 0 : i32
    %18 = arith.cmpi ne, %17, %c0_i32_15 : i32
    scf.if %18 {
      %c0_16 = arith.constant 0 : index
      %c0_17 = arith.constant 0 : index
      %19 = vector.load %arg2[%c0_16, %c0_17] : memref<16x32xf32, #tpu.memory_space<vmem>>, vector<16x32xf32>
      %c0_18 = arith.constant 0 : index
      %c0_19 = arith.constant 0 : index
      %20 = vector.load %arg11[%c0_18, %c0_19] : memref<16x32xf32, #tpu.memory_space<vmem>>, vector<16x32xf32>
      %c0_20 = arith.constant 0 : index
      %c0_21 = arith.constant 0 : index
      %21 = vector.load %arg8[%c0_20, %c0_21] : memref<1x32xf32, #tpu.memory_space<vmem>>, vector<1x32xf32>
      %22 = vector.broadcast %21 : vector<1x32xf32> to vector<16x32xf32>
      %23 = arith.addf %20, %22 : vector<16x32xf32>
      %24 = arith.addf %23, %19 : vector<16x32xf32>
      %c0_22 = arith.constant 0 : index
      %c0_23 = arith.constant 0 : index
      %25 = vector.load %arg9[%c0_22, %c0_23] : memref<16x32xf32, #tpu.memory_space<vmem>>, vector<16x32xf32>
      tpu.vector_store %arg9[%c0_22, %c0_23], %24 {strides = array<i32>} : memref<16x32xf32, #tpu.memory_space<vmem>>, vector<16x32xf32>,
    } else {
    }
    return
  }
  func.func @transform_0(%arg0: i32, %arg1: i32) -> (i32, i32) {
    %c0_i32 = arith.constant 0 : i32
    %c0_i32_0 = arith.constant 0 : i32
    return %arg0, %c0_i32 : i32, i32
  }
  func.func @transform_1(%arg0: i32, %arg1: i32) -> (i32, i32) {
    %c0_i32 = arith.constant 0 : i32
    %c0_i32_0 = arith.constant 0 : i32
    %c0_i32_1 = arith.constant 0 : i32
    return %c0_i32, %c0_i32_0 : i32, i32
  }
  func.func @transform_2(%arg0: i32, %arg1: i32) -> (i32, i32) {
    %c0_i32 = arith.constant 0 : i32
    %c0_i32_0 = arith.constant 0 : i32
    %c0_i32_1 = arith.constant 0 : i32
    return %c0_i32, %c0_i32_0 : i32, i32
  }
  func.func @transform_3(%arg0: i32, %arg1: i32) -> (i32, i32) {
    %c0_i32 = arith.constant 0 : i32
    %c0_i32_0 = arith.constant 0 : i32
    return %c0_i32, %arg1 : i32, i32
  }
  func.func @transform_4(%arg0: i32, %arg1: i32) -> (i32, i32) {
    %c0_i32 = arith.constant 0 : i32
    %c0_i32_0 = arith.constant 0 : i32
    return %c0_i32, %arg1 : i32, i32
  }
  func.func @transform_5(%arg0: i32, %arg1: i32) -> (i32, i32) {
    %c0_i32 = arith.constant 0 : i32
    %c0_i32_0 = arith.constant 0 : i32
    return %arg1, %c0_i32 : i32, i32
  }
  func.func @transform_6(%arg0: i32, %arg1: i32) -> (i32, i32) {
    %c0_i32 = arith.constant 0 : i32
    %c0_i32_0 = arith.constant 0 : i32
    %c0_i32_1 = arith.constant 0 : i32
    return %c0_i32, %c0_i32_0 : i32, i32
  }
  func.func @transform_7(%arg0: i32, %arg1: i32) -> (i32, i32) {
    %c0_i32 = arith.constant 0 : i32
    %c0_i32_0 = arith.constant 0 : i32
    return %arg0, %c0_i32 : i32, i32
  }
}

</mosaic_0001>

<bundles_post_ra>
// kernel: tpu_custom_call.1
= control target key start
LH: loop header
LB: loop body
LE: loop exit
PB: predicated region body
PF: predicated region fallthrough
CT: control target
= control target key end

     0   :  { %vm33_vm0 = vcmask 261120   ;;  %s556_s0 = inlined_call_operand.vmem [shape: f32[16,32], index: 0, kind: input, shape index: {}]   ;;  %s557_s1 = inlined_call_operand.vmem [shape: f32[1,32], index: 1, kind: input, shape index: {}]   ;;  %s558_s2 = inlined_call_operand.vmem [shape: f32[1,32], index: 2, kind: input, shape index: {}]   ;;  %s559_s3 = inlined_call_operand.vmem [shape: f32[32,64], index: 3, kind: input, shape index: {}]   ;;  %s560_s4 = inlined_call_operand.vmem [shape: f32[1,64], index: 4, kind: input, shape index: {}]   ;;  %s561_s5 = inlined_call_operand.vmem [shape: f32[64,32], index: 5, kind: input, shape index: {}]   ;;  %s562_s6 = inlined_call_operand.vmem [shape: f32[1,32], index: 6, kind: input, shape index: {}]   ;;  %s563_s7 = inlined_call_operand.hbm [shape: f32[16,32], index: 7, kind: output, shape index: {}]  }
   0x1   :  { %v469_v0 = vld [vmem:[%s556_s0] sm:$0xff]  ;;  %v474_v1 = vld [vmem:[%s556_s0 + $0x8] sm:$0xff] }
   0x2   :  { %12 = vsyncpa [#allocation5], 0  ;;  %v34_v2 = vsel %vm33_vm0, %v469_v0, 0.0  ;;  %v37_v3 = vsel %vm33_vm0, %v474_v1, 0.0  ;;  %v85_v14 = vld [vmem:[%s559_s3] sm:$0xff]  ;;  %v86_v15 = vld [vmem:[%s559_s3 + $0x8] sm:$0xff] }
   0x3   :  { %35 = vadd.xlane.f32.xlu0 %v34_v2  ;;  %v366_v16 = vpack.c.bf16 %v86_v15, %v85_v14  ;;  %v87_v17 = vld [vmem:[%s559_s3 + $0x10] sm:$0xff]  ;;  %v88_v18 = vld [vmem:[%s559_s3 + $0x18] sm:$0xff]  ;;  %v182_v20 = vld [vmem:[%s561_s5] sm:$0xff]  ;;  %v422_v50 = vmov 0.0   ;;  %vm190_vm1 = vcmask 523264   ;;  %s423_s30 = smov [#allocation4]  }
   0x4   :  { %v370_v19 = vpack.c.bf16 %v88_v18, %v87_v17  ;;  %v183_v21 = vld [vmem:[%s561_s5 + $0x8] sm:$0xff]  ;;  %v184_v22 = vld [vmem:[%s561_s5 + $0x10] sm:$0xff]  ;;  %v185_v24 = vld [vmem:[%s561_s5 + $0x18] sm:$0xff]  ;;  %82 = vst.msk [vmem:[#allocation3 + $0x8] sm:$0xff] %vm33_vm0, %v422_v50  ;;  %s301_s8 = sshll.u32 %s423_s30, 4  ;;  %s302_s8 = int_to_ptr.vmem [resolvable:$true] %s301_s8 }
   0x5   :  { %367 = vmatprep.subr.bf16.mxu0 %v366_v16  ;;  %v374_v23 = vpack.c.bf16 %v183_v21, %v182_v20  ;;  %v378_v25 = vpack.c.bf16 %v185_v24, %v184_v22  ;;  %v186_v26 = vld [vmem:[%s561_s5 + $0x20] sm:$0xff]  ;;  %v187_v27 = vld [vmem:[%s561_s5 + $0x28] sm:$0xff]  ;;  %v188_v47 = vld [vmem:[%s561_s5 + $0x30] sm:$0xff]  ;;  %81 = vst.msk [vmem:[#allocation3] sm:$0xff] %vm33_vm0, %v422_v50  ;;  %s398_s9 = scalar_lea.vmem %s302_s8, 256  ;;  %p403_p1 = scmp.lt.s32.totalorder %s302_s8, %s302_s8 }
   0x6   :  { %369 = vmatpush3.bf16.msra.mxu0 %v366_v16  ;;  %v382_v28 = vpack.c.bf16 %v187_v27, %v186_v26  ;;  %v312_v36 = vld [vmem:[%s557_s1] ss:$0 sm:$0xff]  ;;  %v189_v48 = vld [vmem:[%s561_s5 + $0x38] sm:$0xff]  ;;  %p399_p0 = scmp.ne.s32.totalorder %s302_s8, %s398_s9  ;;  %p404_p2 = scmp.lt.s32.totalorder %s398_s9, %s398_s9 }
   0x7   :  { %38 = vadd.xlane.f32.xlu0 %v37_v3  ;;  %371 = vmatprep.subr.bf16.mxu0 %v370_v19  ;;  %v313_v38 = vld [vmem:[%s558_s2] ss:$0 sm:$0xff]  ;;  %v386_v49 = vpack.c.bf16 %v189_v48, %v188_v47 }
   0x8   :  { %375 = vmatprep.subr.bf16.mxu1 %v374_v23  ;;  %v314_v51 = vld [vmem:[%s560_s4] ss:$0 sm:$0xff]  ;;  %p405_p3 = por %p404_p2, %p403_p1 }
   0x9   :  { %377 = vmatpush3.bf16.msra.mxu1 %v374_v23  ;;  %v319_v2 = vld [vmem:[%s562_s6] ss:$0 sm:$0xff] }
   0xa   :  { %373 = vmatpush3.bf16.msra.mxu0 %v370_v19  ;;  %379 = vmatprep.subr.bf16.mxu1 %v378_v25  ;;  %p406_p4 = pnand %p405_p3, %p399_p0 }
   0xb   :  { %v181_v58 = vld [vmem:[#allocation3 + $0x8] sm:$0xff] }
   0xc   :  { %v180_v59 = vld [vmem:[#allocation3] sm:$0xff] }
   0xd   :  { %381 = vmatpush3.bf16.msra.mxu1 %v378_v25 }
   0xe   :  { %383 = vmatprep.subr.bf16.mxu1 %v382_v28 }
  0x11   :  { %385 = vmatpush3.bf16.msra.mxu1 %v382_v28 }
  0x12   :  { %387 = vmatprep.subr.bf16.mxu1 %v386_v49 }
  0x15   :  { %389 = vmatpush3.bf16.msra.mxu1 %v386_v49 }
  0x90   :  { %v36_v4 = vpop.xlane.xlu0 %35 }
  0x91   :  { %v41_v5 = vmul.f32 0.03125, %v36_v4 }
  0x93   :  { %v43_v6 = vsub.f32 %v469_v0, %v41_v5 }
  0x94   :  { %v39_v7 = vpop.xlane.xlu0 %38 }
  0x95   :  { %v42_v8 = vmul.f32 0.03125, %v39_v7  ;;  %v45_v9 = vmul.f32 %v43_v6, %v43_v6 }
  0x97   :  { %v44_v10 = vsub.f32 %v474_v1, %v42_v8  ;;  %v47_v11 = vsel %vm33_vm0, %v45_v9, 0.0 }
  0x98   :  { %48 = vadd.xlane.f32.xlu1 %v47_v11 }
  0x99   :  { %v46_v12 = vmul.f32 %v44_v10, %v44_v10 }
  0x9b   :  { %v50_v13 = vsel %vm33_vm0, %v46_v12, 0.0 }
  0x9c   :  { %51 = vadd.xlane.f32.xlu1 %v50_v13 }
 0x125   :  { %v49_v29 = vpop.xlane.xlu1 %48 }
 0x126   :  { %v53_v30 = vmul.f32 0.03125, %v49_v29 }
 0x128   :  { %v55_v31 = vadd.f32 1e-06, %v53_v30 }
 0x129   :  { %v52_v32 = vpop.xlane.xlu1 %51 }
 0x12a   :  { %394 = vrsqrt.f32 %v55_v31  ;;  %v54_v33 = vmul.f32 0.03125, %v52_v32 }
 0x12c   :  { %v56_v34 = vadd.f32 1e-06, %v54_v33 }
 0x12e   :  { %396 = vrsqrt.f32 %v56_v34 }
 0x134   :  { %v395_v35 = vpop.eup %394 }
 0x135   :  { %v59_v37 = vmul.f32 %v395_v35, %v43_v6 }
 0x137   :  { %v68_v39 = vmul.f32 %v312_v36, %v59_v37 }
 0x138   :  { %v397_v40 = vpop.eup %396 }
 0x139   :  { %v77_v41 = vadd.f32 %v313_v38, %v68_v39  ;;  %v60_v42 = vmul.f32 %v397_v40, %v44_v10 }
 0x13b   :  { %79 = vst.msk [vmem:[#allocation2] sm:$0xff] %vm33_vm0, %v77_v41  ;;  %v69_v43 = vmul.f32 %v312_v36, %v60_v42 }
 0x13d   :  { %v78_v44 = vadd.f32 %v313_v38, %v69_v43 }
 0x13f   :  { %80 = vst.msk [vmem:[#allocation2 + $0x8] sm:$0xff] %vm33_vm0, %v78_v44 }
 0x142   :  { %v83_v45 = vld [vmem:[#allocation2] sm:$0xff] }
 0x143   :  { %344 = vmatprep.mubr.msk.f32.mxu0 %vm33_vm0, %v83_v45 }
 0x146   :  { %v84_v46 = vld [vmem:[#allocation2 + $0x8] sm:$0xff] }
 0x147   :  { %345 = vmatmul.mubr.msk.f32.vlgmr.msra.gmra.mrb[0].mxu0 %vm33_vm0, %v84_v46 }
 0x21a   :  { %v346_v52 = vpop.f32.mrb[0].mxu0 }
 0x21b   :  { %v175_v53 = vadd.f32 %v346_v52, %v314_v51  ;;  %v169_v54 = vpop.f32.mrb[1].mxu0 }
 0x21c   :  { %v170_v55 = vadd.f32 %v314_v51, %v169_v54 }
 0x21d   :  { %v179_v57 = vmax.f32 %v175_v53, 0.0 }
 0x21e   :  { %v178_v56 = vmax.f32 %v170_v55, 0.0 }
 0x220   :  { %363 = vmatprep.mubr.msk.f32.mxu1 %vm190_vm1, %v178_v56 }
 0x221   :  { %364 = vmatmul.mubr.msk.f32.vlgmr.msra.gmra.mrb[0].mxu1 %vm190_vm1, %v179_v57 }
 0x2f4   :  { %v365_v60 = vpop.f32.mrb[0].mxu1 }
 0x2f5   :  { %v273_v61 = vadd.f32 %v365_v60, %v181_v58  ;;  %v263_v62 = vpop.f32.mrb[1].mxu1 }
 0x2f6   :  { %v272_v63 = vadd.f32 %v263_v62, %v180_v59 }
 0x2f7   :  { %275 = vst.msk [vmem:[#allocation3 + $0x8] sm:$0xff] %vm33_vm0, %v273_v61 }
 0x2f8   :  { %274 = vst.msk [vmem:[#allocation3] sm:$0xff] %vm33_vm0, %v272_v63 }
 0x2fe   :  { %v282_v3 = vld [vmem:[#allocation3 + $0x8] sm:$0xff] }
 0x2ff   :  { %v281_v4 = vld [vmem:[#allocation3] sm:$0xff]  ;;  %v291_v5 = vadd.f32 %v319_v2, %v282_v3 }
 0x300   :  { %v290_v6 = vadd.f32 %v319_v2, %v281_v4 }
 0x301   :  { %v293_v7 = vadd.f32 %v291_v5, %v474_v1 }
 0x302   :  { %v292_v8 = vadd.f32 %v290_v6, %v469_v0 }
 0x303   :  { %295 = vst.msk [vmem:[#allocation4 + $0x8] sm:$0xff] %vm33_vm0, %v293_v7 }
 0x304   :  { %294 = vst.msk [vmem:[#allocation4] sm:$0xff] %vm33_vm0, %v292_v8 }
 0x305   :  { %409 = shalt.err (!%p406_p4)
}
 0x306   :  { %s410_s11 = scalar_lea.hbm %s563_s7, 256 }
 0x307   :  { %p411_p5 = scmp.ne.s32.totalorder %s563_s7, %s410_s11  ;;  %p414_p6 = scmp.lt.u32.totalorder %s410_s11, %s563_s7 }
 0x309   :  { %p416_p7 = pnand %p414_p6, %p411_p5 }
 0x30b   :  { %419 = shalt.err (!%p416_p7)
}
 0x30c   :  { %s424_s16 = smov 128   ;;  %s425_s17 = smov 8  }
 0x30d   :  { %307 = dma.vmem_to_hbm [thread:$0]  %s302_s8, 256, %s563_s7, [#allocation5], %s424_s16, %s424_s16, %s425_s17  }
 0x30e   :  { %420 = dma.done.wait [#allocation5], 256  }
 0x30f   :  { %421 = vsyncadd [#allocation5], 4294967040 }
 0x310   :  { %311 = vsyncpa [#allocation5], 1 }

</bundles_post_ra>
